<compile_context>
chip_gen: v5e
topology: v5e:2x2
jax: 0.10.0
libtpu: 0.0.40
codegen_flags: <defaults>
</compile_context>

<pallas_src>
import jax
import jax.numpy as jnp
from jax.experimental import pallas as pl
from jax.experimental.pallas import tpu as pltpu


FOLD = 8  # batch rows folded into the lane dim: K = FOLD*16 = 128 exactly
          # fills the v5e MXU contraction dim; dense enough on v6e/v7x too.


def _round_up(n, m):
    return ((n + m - 1) // m) * m


def _mlp_kernel(x_ref, w1_ref, b1_ref, w2_ref, b2_ref, w3_ref, b3_ref, o_ref):
    # x arrives in its HBM dtype (f32); cast to the MXU dtype here on the VPU
    # (free filler slot) rather than in the wrapper (extra HBM pass of x).
    x = x_ref[...].astype(w1_ref.dtype)
    # Layer 1: Linear + ReLU (MXU matmul, f32 accumulation; bias/ReLU in f32)
    h = jnp.dot(x, w1_ref[...], preferred_element_type=jnp.float32)
    h = jnp.maximum(h + b1_ref[...], 0.0)
    h = h.astype(w2_ref.dtype)
    # Layer 2: Linear + ReLU
    h = jnp.dot(h, w2_ref[...], preferred_element_type=jnp.float32)
    h = jnp.maximum(h + b2_ref[...], 0.0)
    h = h.astype(w3_ref.dtype)
    # Output layer: Linear + Identity (out_act_fn='identity')
    o = jnp.dot(h, w3_ref[...], preferred_element_type=jnp.float32)
    o_ref[...] = (o + b3_ref[...]).astype(o_ref.dtype)  # lane-dense (64) store


def sequential_network_forward(x, params, *, tile_b=4096,
                               compute_dtype=jnp.bfloat16):
    """Fused 3-layer MLP forward (Linear->ReLU->Linear->ReLU->Linear).

    x:       (B, in_dim) activations, or a list of arrays concatenated on dim 1
             (mirrors SequentialNetwork.forward's list branch).
    params:  dict w1,b1,w2,b2,w3,b3 (weights (in,out), biases (1,out)), f32.
    tile_b:  requested batch tile in *rows* (default 4096; VMEM is not the
             limiter -- tiles are KB-scale -- so go big to amortize the
             ~0.35 us per-grid-step overhead).
    compute_dtype: MXU input dtype.  bf16 by default (native on v6e/v7x);
             accumulation / bias / ReLU are always f32.  Use jnp.float32 on
             v5e or when bit-exactness vs. an f32 reference is needed.
    """
    if isinstance(x, (list, tuple)):
        x = jnp.concatenate(x, axis=1)

    w1, b1, w2, b2, w3, b3 = (params[k] for k in ("w1", "b1", "w2", "b2", "w3", "b3"))
    B, in_dim = x.shape
    h1, h2, out_dim = w1.shape[1], w2.shape[1], w3.shape[1]

    # ---- Fold FOLD batch rows into the lane axis (layout plumbing, no compute).
    # Only a <FOLD-row pad when B isn't a multiple of the fold; the expensive
    # tile-level pad of the previous version is gone (grid clipping instead).
    padded_B = _round_up(B, FOLD)
    if padded_B != B:
        x = jnp.pad(x, ((0, padded_B - B), (0, 0)))
    bf = padded_B // FOLD
    xf = x.reshape(bf, FOLD * in_dim)            # contiguous row-major: free

    eye = jnp.eye(FOLD, dtype=compute_dtype)
    w1f = jnp.kron(eye, w1.astype(compute_dtype))    # (FOLD*in,  FOLD*h1)
    w2f = jnp.kron(eye, w2.astype(compute_dtype))    # (FOLD*h1,  FOLD*h2)
    w3f = jnp.kron(eye, w3.astype(compute_dtype))    # (FOLD*h2,  FOLD*out)
    b1f = jnp.tile(b1.astype(jnp.float32), (1, FOLD))
    b2f = jnp.tile(b2.astype(jnp.float32), (1, FOLD))
    b3f = jnp.tile(b3.astype(jnp.float32), (1, FOLD))

    # ---- Batch tile (in folded rows).  Big tile for overhead amortization,
    # then shrink (floor 32 folded rows = 256 batch rows) until the grid has
    # >= 8 steps so the "parallel" axis spans both v7x TensorCores.
    if bf <= 8:
        tb = bf                                   # single block == full array
    else:
        tb = max(8, (tile_b // FOLD) // 8 * 8)    # sublane-aligned
        tb = min(tb, (bf // 8) * 8)               # never exceed the array
        while tb >= 64 and pl.cdiv(bf, tb) < 8:
            tb //= 2
    grid = (pl.cdiv(bf, tb),)                     # ragged last tile is clipped

    x_spec = pl.BlockSpec((tb, FOLD * in_dim), lambda i: (i, 0))
    out_spec = pl.BlockSpec((tb, FOLD * out_dim), lambda i: (i, 0))
    # Constant index_map -> weights/biases DMA'd once, stay VMEM-resident.
    const = lambda a: pl.BlockSpec(a.shape, lambda i: (0, 0))

    flops = 2 * B * (in_dim * h1 + h1 * h2 + h2 * out_dim)
    bytes_accessed = (
        xf.size * xf.dtype.itemsize
        + padded_B * out_dim * 4
        + sum(a.size * a.dtype.itemsize for a in (w1f, w2f, w3f, b1f, b2f, b3f))
    )

    outf = pl.pallas_call(
        _mlp_kernel,
        out_shape=jax.ShapeDtypeStruct((bf, FOLD * out_dim), jnp.float32),
        grid=grid,
        in_specs=[
            x_spec,
            const(w1f), const(b1f),
            const(w2f), const(b2f),
            const(w3f), const(b3f),
        ],
        out_specs=out_spec,
        compiler_params=pltpu.CompilerParams(
            dimension_semantics=("parallel",),    # megacore sharding on v7x
        ),
        cost_estimate=pl.CostEstimate(
            flops=flops, transcendentals=0, bytes_accessed=bytes_accessed
        ),
    )(xf, w1f, b1f, w2f, b2f, w3f, b3f)

    out = outf.reshape(padded_B, out_dim)         # un-fold: free reshape
    return out[:B] if padded_B != B else out


def init_params(key, in_dim, hidden, out_dim):
    """Deterministic init mimicking torch.nn.Linear default U[-1/sqrt(fan_in), ...]."""
    def linear(key, fan_in, fan_out):
        kw, kb = jax.random.split(key)
        bound = 1.0 / jnp.sqrt(jnp.float32(fan_in))
        # torch stores (out, in); transpose to (in, out) for x @ W.
        w = jax.random.uniform(kw, (fan_out, fan_in), jnp.float32, -bound, bound).T
        b = jax.random.uniform(kb, (1, fan_out), jnp.float32, -bound, bound)
        return w, b

    k1, k2, k3 = jax.random.split(key, 3)
    w1, b1 = linear(k1, in_dim, hidden)
    w2, b2 = linear(k2, hidden, hidden)
    w3, b3 = linear(k3, hidden, out_dim)
    return {"w1": w1, "b1": b1, "w2": w2, "b2": b2, "w3": w3, "b3": b3}


def reference_forward(x, p):
    h = jnp.maximum(x @ p["w1"] + p["b1"], 0.0)
    h = jnp.maximum(h @ p["w2"] + p["b2"], 0.0)
    return h @ p["w3"] + p["b3"]


if __name__ == "__main__":
    key = jax.random.PRNGKey(0)
    kx, kp, kx2 = jax.random.split(key, 3)

    batch, in_dim, hidden, out_dim = 2, 16, 32, 8
    params = init_params(kp, in_dim, hidden, out_dim)

    # 1) Nominal small shape (batch=2), exact f32 path; exercises the
    #    fold-remainder pad (2 -> 8) and a single clipped block.
    x_small = jax.random.normal(kx, (batch, in_dim), jnp.float32)
    out_small = jax.block_until_ready(
        sequential_network_forward(x_small, params, compute_dtype=jnp.float32)
    )
    ref_small = reference_forward(x_small, params)
    assert out_small.shape == (batch, out_dim)
    assert jnp.allclose(out_small, ref_small, atol=1e-5, rtol=1e-5)

    # 2) Larger batch (multiple of 8, not of the tile): f32 path; exercises the
    #    cdiv grid with a clipped last tile and the grid-balancing heuristic.
    x_big = jax.random.normal(kx2, (1000, in_dim), jnp.float32)
    out_big = jax.block_until_ready(
        sequential_network_forward(x_big, params, compute_dtype=jnp.float32)
    )
    ref_big = reference_forward(x_big, params)
    assert out_big.shape == (1000, out_dim)
    assert jnp.allclose(out_big, ref_big, atol=1e-4, rtol=1e-4)

    # 3) Default bf16 MXU path (recommended on v6e/v7x); f32 accumulation keeps
    #    accuracy, compared against the f32 reference with bf16-level tolerance.
    out_bf16 = jax.block_until_ready(sequential_network_forward(x_big, params))
    assert out_bf16.shape == (1000, out_dim)
    assert jnp.allclose(out_bf16, ref_big, atol=5e-2, rtol=5e-2)

    print("KERNEL_OK")
</pallas_src>

<mosaic_0001>
module attributes {stable_mosaic.version = 11 : i64} {
  func.func @_mlp_kernel(%arg0: i32, %arg1: memref<1x128xf32, #tpu.memory_space<vmem>>, %arg2: memref<128x256xf32, #tpu.memory_space<vmem>>, %arg3: memref<1x256xf32, #tpu.memory_space<vmem>>, %arg4: memref<256x256xf32, #tpu.memory_space<vmem>>, %arg5: memref<1x256xf32, #tpu.memory_space<vmem>>, %arg6: memref<256x64xf32, #tpu.memory_space<vmem>>, %arg7: memref<1x64xf32, #tpu.memory_space<vmem>>, %arg8: memref<1x64xf32, #tpu.memory_space<vmem>>) attributes {dimension_semantics = [#tpu.dimension_semantics<parallel>], iteration_bounds = array<i64: 1>, scalar_prefetch = 0 : i64, scratch_operands = 0 : i64, tpu.core_type = #tpu.core_type<tc>, window_params = [{transform_indices = @transform_0, window_bounds = array<i64: 1, 128>}, {pipeline_mode = #tpu.pipeline_mode<synchronous>, transform_indices = @transform_1, window_bounds = array<i64: 128, 256>}, {pipeline_mode = #tpu.pipeline_mode<synchronous>, transform_indices = @transform_2, window_bounds = array<i64: 1, 256>}, {pipeline_mode = #tpu.pipeline_mode<synchronous>, transform_indices = @transform_3, window_bounds = array<i64: 256, 256>}, {pipeline_mode = #tpu.pipeline_mode<synchronous>, transform_indices = @transform_4, window_bounds = array<i64: 1, 256>}, {pipeline_mode = #tpu.pipeline_mode<synchronous>, transform_indices = @transform_5, window_bounds = array<i64: 256, 64>}, {pipeline_mode = #tpu.pipeline_mode<synchronous>, transform_indices = @transform_6, window_bounds = array<i64: 1, 64>}, {transform_indices = @transform_7, window_bounds = array<i64: 1, 64>}]} {
    %c0 = arith.constant 0 : index
    %c0_0 = arith.constant 0 : index
    %0 = vector.load %arg1[%c0, %c0_0] : memref<1x128xf32, #tpu.memory_space<vmem>>, vector<1x128xf32>
    %c0_1 = arith.constant 0 : index
    %c0_2 = arith.constant 0 : index
    %1 = vector.load %arg2[%c0_1, %c0_2] : memref<128x256xf32, #tpu.memory_space<vmem>>, vector<128x256xf32>
    %cst = arith.constant dense<0.000000e+00> : vector<1x256xf32>
    %2 = tpu.matmul %0, %1, %cst {dimension_numbers = #tpu.dot_dimension_numbers<[1], [0], [0], [1], [0, 0, 1, 1], [], []>} : vector<1x128xf32>, vector<128x256xf32>, vector<1x256xf32> -> vector<1x256xf32>
    %c0_3 = arith.constant 0 : index
    %c0_4 = arith.constant 0 : index
    %3 = vector.load %arg3[%c0_3, %c0_4] : memref<1x256xf32, #tpu.memory_space<vmem>>, vector<1x256xf32>
    %4 = arith.addf %2, %3 : vector<1x256xf32>
    %cst_5 = arith.constant 0.000000e+00 : f32
    %5 = vector.broadcast %cst_5 : f32 to vector<1x256xf32>
    %6 = arith.maximumf %4, %5 : vector<1x256xf32>
    %c0_6 = arith.constant 0 : index
    %c0_7 = arith.constant 0 : index
    %7 = vector.load %arg4[%c0_6, %c0_7] : memref<256x256xf32, #tpu.memory_space<vmem>>, vector<256x256xf32>
    %cst_8 = arith.constant dense<0.000000e+00> : vector<1x256xf32>
    %8 = tpu.matmul %6, %7, %cst_8 {dimension_numbers = #tpu.dot_dimension_numbers<[1], [0], [0], [1], [0, 0, 1, 1], [], []>} : vector<1x256xf32>, vector<256x256xf32>, vector<1x256xf32> -> vector<1x256xf32>
    %c0_9 = arith.constant 0 : index
    %c0_10 = arith.constant 0 : index
    %9 = vector.load %arg5[%c0_9, %c0_10] : memref<1x256xf32, #tpu.memory_space<vmem>>, vector<1x256xf32>
    %10 = arith.addf %8, %9 : vector<1x256xf32>
    %cst_11 = arith.constant 0.000000e+00 : f32
    %11 = vector.broadcast %cst_11 : f32 to vector<1x256xf32>
    %12 = arith.maximumf %10, %11 : vector<1x256xf32>
    %c0_12 = arith.constant 0 : index
    %c0_13 = arith.constant 0 : index
    %13 = vector.load %arg6[%c0_12, %c0_13] : memref<256x64xf32, #tpu.memory_space<vmem>>, vector<256x64xf32>
    %cst_14 = arith.constant dense<0.000000e+00> : vector<1x64xf32>
    %14 = tpu.matmul %12, %13, %cst_14 {dimension_numbers = #tpu.dot_dimension_numbers<[1], [0], [0], [1], [0, 0, 1, 1], [], []>} : vector<1x256xf32>, vector<256x64xf32>, vector<1x64xf32> -> vector<1x64xf32>
    %c0_15 = arith.constant 0 : index
    %c0_16 = arith.constant 0 : index
    %15 = vector.load %arg7[%c0_15, %c0_16] : memref<1x64xf32, #tpu.memory_space<vmem>>, vector<1x64xf32>
    %16 = arith.addf %14, %15 : vector<1x64xf32>
    %c0_17 = arith.constant 0 : index
    %c0_18 = arith.constant 0 : index
    %17 = vector.load %arg8[%c0_17, %c0_18] : memref<1x64xf32, #tpu.memory_space<vmem>>, vector<1x64xf32>
    tpu.vector_store %arg8[%c0_17, %c0_18], %16 {strides = array<i32>} : memref<1x64xf32, #tpu.memory_space<vmem>>, vector<1x64xf32>,
    return
  }
  func.func @transform_0(%arg0: i32) -> (i32, i32) {
    %c0_i32 = arith.constant 0 : i32
    %c0_i32_0 = arith.constant 0 : i32
    return %arg0, %c0_i32 : i32, i32
  }
  func.func @transform_1(%arg0: i32) -> (i32, i32) {
    %c0_i32 = arith.constant 0 : i32
    %c0_i32_0 = arith.constant 0 : i32
    %c0_i32_1 = arith.constant 0 : i32
    return %c0_i32, %c0_i32_0 : i32, i32
  }
  func.func @transform_2(%arg0: i32) -> (i32, i32) {
    %c0_i32 = arith.constant 0 : i32
    %c0_i32_0 = arith.constant 0 : i32
    %c0_i32_1 = arith.constant 0 : i32
    return %c0_i32, %c0_i32_0 : i32, i32
  }
  func.func @transform_3(%arg0: i32) -> (i32, i32) {
    %c0_i32 = arith.constant 0 : i32
    %c0_i32_0 = arith.constant 0 : i32
    %c0_i32_1 = arith.constant 0 : i32
    return %c0_i32, %c0_i32_0 : i32, i32
  }
  func.func @transform_4(%arg0: i32) -> (i32, i32) {
    %c0_i32 = arith.constant 0 : i32
    %c0_i32_0 = arith.constant 0 : i32
    %c0_i32_1 = arith.constant 0 : i32
    return %c0_i32, %c0_i32_0 : i32, i32
  }
  func.func @transform_5(%arg0: i32) -> (i32, i32) {
    %c0_i32 = arith.constant 0 : i32
    %c0_i32_0 = arith.constant 0 : i32
    %c0_i32_1 = arith.constant 0 : i32
    return %c0_i32, %c0_i32_0 : i32, i32
  }
  func.func @transform_6(%arg0: i32) -> (i32, i32) {
    %c0_i32 = arith.constant 0 : i32
    %c0_i32_0 = arith.constant 0 : i32
    %c0_i32_1 = arith.constant 0 : i32
    return %c0_i32, %c0_i32_0 : i32, i32
  }
  func.func @transform_7(%arg0: i32) -> (i32, i32) {
    %c0_i32 = arith.constant 0 : i32
    %c0_i32_0 = arith.constant 0 : i32
    return %arg0, %c0_i32 : i32, i32
  }
}

</mosaic_0001>

<bundles_post_ra>
// kernel: tpu_custom_call.1
= control target key start
LH: loop header
LB: loop body
LE: loop exit
PB: predicated region body
PF: predicated region fallthrough
CT: control target
= control target key end

     0   :  { %12 = vsyncpa [#allocation3], 0  ;;  %s678_s0 = inlined_call_operand.vmem [shape: f32[1,128], index: 0, kind: input, shape index: {}]   ;;  %s679_s1 = inlined_call_operand.vmem [shape: f32[128,256], index: 1, kind: input, shape index: {}]   ;;  %s680_s2 = inlined_call_operand.vmem [shape: f32[1,256], index: 2, kind: input, shape index: {}]   ;;  %s681_s3 = inlined_call_operand.hbm [shape: f32[256,256], index: 3, kind: input, shape index: {}]   ;;  %s682_s4 = inlined_call_operand.vmem [shape: f32[1,256], index: 4, kind: input, shape index: {}]   ;;  %s683_s5 = inlined_call_operand.vmem [shape: f32[256,64], index: 5, kind: input, shape index: {}]   ;;  %s684_s6 = inlined_call_operand.vmem [shape: f32[1,64], index: 6, kind: input, shape index: {}]   ;;  %s685_s7 = inlined_call_operand.hbm [shape: f32[1,64], index: 7, kind: output, shape index: {}]  }
   0x1   :  { %13 = vsyncpa [#allocation4], 0  ;;  %s24_s26 = sshll.u32 %s681_s3, 4  ;;  %s424_s27 = smov [#allocation2]   ;;  %s25_s26 = int_to_ptr.hbm [resolvable:$true] %s24_s26 }
   0x2   :  { %s26_s28 = sshll.u32 %s424_s27, 4  ;;  %s425_s29 = smov 256   ;;  %s27_s28 = int_to_ptr.vmem [resolvable:$true] %s26_s28 }
   0x3   :  { %s426_s30 = smov 16  }
   0x4   :  { %32 = dma.hbm_to_vmem [thread:$0]  %s25_s26, 8192, %s27_s28, [#allocation3], %s425_s29, %s425_s29, %s426_s30  }
   0x5   :  { %420 = dma.done.wait [#allocation3], 8192  }
   0x6   :  { %421 = vsyncadd [#allocation3], 4294959104  ;;  %v74_v0 = vld [vmem:[%s679_s1 + $0xf0] sm:$0xff]  ;;  %v72_v1 = vld [vmem:[%s679_s1 + $0xe0] sm:$0xff]  ;;  %vm349_vm0 = vcmask 516096  }
   0x7   :  { %v75_v2 = vld [vmem:[%s679_s1 + $0xf8] sm:$0xff]  ;;  %82 = vmatpush.msra.mxu0 %v74_v0  ;;  %v73_v3 = vld [vmem:[%s679_s1 + $0xe8] sm:$0xff]  ;;  %v70_v4 = vld [vmem:[%s679_s1 + $0xd0] sm:$0xff] }
   0x8   :  { %102 = vmatpush.msra.mxu1 %v75_v2  ;;  %v71_v5 = vld [vmem:[%s679_s1 + $0xd8] sm:$0xff]  ;;  %v68_v6 = vld [vmem:[%s679_s1 + $0xc0] sm:$0xff]  ;;  %v69_v7 = vld [vmem:[%s679_s1 + $0xc8] sm:$0xff] }
   0x9   :  { %83 = vmatpush.msra.mxu0 %v72_v1  ;;  %v66_v8 = vld [vmem:[%s679_s1 + $0xb0] sm:$0xff]  ;;  %v67_v9 = vld [vmem:[%s679_s1 + $0xb8] sm:$0xff]  ;;  %v64_v10 = vld [vmem:[%s679_s1 + $0xa0] sm:$0xff] }
   0xa   :  { %103 = vmatpush.msra.mxu1 %v73_v3  ;;  %v65_v11 = vld [vmem:[%s679_s1 + $0xa8] sm:$0xff]  ;;  %v62_v12 = vld [vmem:[%s679_s1 + $0x90] sm:$0xff]  ;;  %v63_v13 = vld [vmem:[%s679_s1 + $0x98] sm:$0xff] }
   0xb   :  { %84 = vmatpush.msra.mxu0 %v70_v4  ;;  %v154_v14 = vld [vmem:[#allocation2 + $0xf0] sm:$0xff]  ;;  %v152_v15 = vld [vmem:[#allocation2 + $0xe0] sm:$0xff]  ;;  %v61_v17 = vld [vmem:[%s679_s1 + $0x88] sm:$0xff] }
   0xc   :  { %104 = vmatpush.msra.mxu1 %v71_v5  ;;  %v60_v16 = vld [vmem:[%s679_s1 + $0x80] sm:$0xff]  ;;  %194 = vmatpush.msra.mxu2 %v154_v14  ;;  %v186_v18 = vld [vmem:[#allocation2 + $0x1f0] sm:$0xff]  ;;  %v59_v22 = vld [vmem:[%s679_s1 + $0x78] sm:$0xff] }
   0xd   :  { %85 = vmatpush.msra.mxu0 %v68_v6  ;;  %v150_v19 = vld [vmem:[#allocation2 + $0xd0] sm:$0xff]  ;;  %v184_v20 = vld [vmem:[#allocation2 + $0x1e0] sm:$0xff]  ;;  %214 = vmatpush.msra.mxu3 %v186_v18  ;;  %v57_v26 = vld [vmem:[%s679_s1 + $0x68] sm:$0xff] }
   0xe   :  { %105 = vmatpush.msra.mxu1 %v69_v7  ;;  %v58_v21 = vld [vmem:[%s679_s1 + $0x70] sm:$0xff]  ;;  %195 = vmatpush.msra.mxu2 %v152_v15  ;;  %v148_v23 = vld [vmem:[#allocation2 + $0xc0] sm:$0xff]  ;;  %v55_v30 = vld [vmem:[%s679_s1 + $0x58] sm:$0xff] }
   0xf   :  { %86 = vmatpush.msra.mxu0 %v66_v8  ;;  %v182_v24 = vld [vmem:[#allocation2 + $0x1d0] sm:$0xff]  ;;  %v56_v25 = vld [vmem:[%s679_s1 + $0x60] sm:$0xff]  ;;  %215 = vmatpush.msra.mxu3 %v184_v20  ;;  %v53_v34 = vld [vmem:[%s679_s1 + $0x48] sm:$0xff] }
  0x10   :  { %106 = vmatpush.msra.mxu1 %v67_v9  ;;  %196 = vmatpush.msra.mxu2 %v150_v19  ;;  %v146_v27 = vld [vmem:[#allocation2 + $0xb0] sm:$0xff]  ;;  %v180_v28 = vld [vmem:[#allocation2 + $0x1c0] sm:$0xff]  ;;  %v51_v38 = vld [vmem:[%s679_s1 + $0x38] sm:$0xff] }
  0x11   :  { %87 = vmatpush.msra.mxu0 %v64_v10  ;;  %v54_v29 = vld [vmem:[%s679_s1 + $0x50] sm:$0xff]  ;;  %216 = vmatpush.msra.mxu3 %v182_v24  ;;  %v144_v31 = vld [vmem:[#allocation2 + $0xa0] sm:$0xff]  ;;  %v49_v42 = vld [vmem:[%s679_s1 + $0x28] sm:$0xff] }
  0x12   :  { %107 = vmatpush.msra.mxu1 %v65_v11  ;;  %197 = vmatpush.msra.mxu2 %v148_v23  ;;  %v178_v32 = vld [vmem:[#allocation2 + $0x1b0] sm:$0xff]  ;;  %v52_v33 = vld [vmem:[%s679_s1 + $0x40] sm:$0xff]  ;;  %v47_v46 = vld [vmem:[%s679_s1 + $0x18] sm:$0xff] }
  0x13   :  { %88 = vmatpush.msra.mxu0 %v62_v12  ;;  %217 = vmatpush.msra.mxu3 %v180_v28  ;;  %v142_v35 = vld [vmem:[#allocation2 + $0x90] sm:$0xff]  ;;  %v176_v36 = vld [vmem:[#allocation2 + $0x1a0] sm:$0xff]  ;;  %v45_v50 = vld [vmem:[%s679_s1 + $0x8] sm:$0xff] }
  0x14   :  { %108 = vmatpush.msra.mxu1 %v63_v13  ;;  %198 = vmatpush.msra.mxu2 %v146_v27  ;;  %v50_v37 = vld [vmem:[%s679_s1 + $0x30] sm:$0xff]  ;;  %v140_v39 = vld [vmem:[#allocation2 + $0x80] sm:$0xff]  ;;  %v155_v52 = vld [vmem:[#allocation2 + $0xf8] sm:$0xff] }
  0x15   :  { %89 = vmatpush.msra.mxu0 %v60_v16  ;;  %218 = vmatpush.msra.mxu3 %v178_v32  ;;  %v174_v40 = vld [vmem:[#allocation2 + $0x190] sm:$0xff]  ;;  %v48_v41 = vld [vmem:[%s679_s1 + $0x20] sm:$0xff]  ;;  %v187_v53 = vld [vmem:[#allocation2 + $0x1f8] sm:$0xff] }
  0x16   :  { %109 = vmatpush.msra.mxu1 %v61_v17  ;;  %199 = vmatpush.msra.mxu2 %v144_v31  ;;  %v138_v43 = vld [vmem:[#allocation2 + $0x70] sm:$0xff]  ;;  %v172_v44 = vld [vmem:[#allocation2 + $0x180] sm:$0xff]  ;;  %v153_v56 = vld [vmem:[#allocation2 + $0xe8] sm:$0xff] }
  0x17   :  { %90 = vmatpush.msra.mxu0 %v58_v21  ;;  %219 = vmatpush.msra.mxu3 %v176_v36  ;;  %v46_v45 = vld [vmem:[%s679_s1 + $0x10] sm:$0xff]  ;;  %v136_v47 = vld [vmem:[#allocation2 + $0x60] sm:$0xff]  ;;  %v185_v57 = vld [vmem:[#allocation2 + $0x1e8] sm:$0xff] }
  0x18   :  { %110 = vmatpush.msra.mxu1 %v59_v22  ;;  %200 = vmatpush.msra.mxu2 %v142_v35  ;;  %v170_v48 = vld [vmem:[#allocation2 + $0x170] sm:$0xff]  ;;  %v44_v49 = vld [vmem:[%s679_s1] sm:$0xff]  ;;  %v151_v60 = vld [vmem:[#allocation2 + $0xd8] sm:$0xff] }
  0x19   :  { %91 = vmatpush.msra.mxu0 %v56_v25  ;;  %220 = vmatpush.msra.mxu3 %v174_v40  ;;  %v43_v51 = vld [vmem:[%s678_s0] sm:$0x1]  ;;  %v134_v54 = vld [vmem:[#allocation2 + $0x50] sm:$0xff]  ;;  %v183_v61 = vld [vmem:[#allocation2 + $0x1d8] sm:$0xff] }
  0x1a   :  { %111 = vmatpush.msra.mxu1 %v57_v26  ;;  %201 = vmatpush.msra.mxu2 %v140_v39  ;;  %v168_v55 = vld [vmem:[#allocation2 + $0x160] sm:$0xff]  ;;  %v166_v59 = vld [vmem:[#allocation2 + $0x150] sm:$0xff]  ;;  %v149_v0 = vld [vmem:[#allocation2 + $0xc8] sm:$0xff] }
  0x1b   :  { %92 = vmatpush.msra.mxu0 %v54_v29  ;;  %221 = vmatpush.msra.mxu3 %v172_v44  ;;  %v132_v58 = vld [vmem:[#allocation2 + $0x40] sm:$0xff]  ;;  %v130_v62 = vld [vmem:[#allocation2 + $0x30] sm:$0xff]  ;;  %v181_v1 = vld [vmem:[#allocation2 + $0x1c8] sm:$0xff] }
  0x1c   :  { %112 = vmatpush.msra.mxu1 %v55_v30  ;;  %202 = vmatpush.msra.mxu2 %v138_v43  ;;  %v164_v63 = vld [vmem:[#allocation2 + $0x140] sm:$0xff]  ;;  %v147_v2 = vld [vmem:[#allocation2 + $0xb8] sm:$0xff]  ;;  %v145_v4 = vld [vmem:[#allocation2 + $0xa8] sm:$0xff] }
  0x1d   :  { %93 = vmatpush.msra.mxu0 %v52_v33  ;;  %222 = vmatpush.msra.mxu3 %v170_v48  ;;  %v179_v3 = vld [vmem:[#allocation2 + $0x1b8] sm:$0xff]  ;;  %v177_v5 = vld [vmem:[#allocation2 + $0x1a8] sm:$0xff]  ;;  %v128_v19 = vld [vmem:[#allocation2 + $0x20] sm:$0xff] }
  0x1e   :  { %113 = vmatpush.msra.mxu1 %v53_v34  ;;  %203 = vmatpush.msra.mxu2 %v136_v47  ;;  %v143_v6 = vld [vmem:[#allocation2 + $0x98] sm:$0xff]  ;;  %v141_v8 = vld [vmem:[#allocation2 + $0x88] sm:$0xff]  ;;  %v162_v20 = vld [vmem:[#allocation2 + $0x130] sm:$0xff] }
  0x1f   :  { %94 = vmatpush.msra.mxu0 %v50_v37  ;;  %223 = vmatpush.msra.mxu3 %v168_v55  ;;  %v175_v7 = vld [vmem:[#allocation2 + $0x198] sm:$0xff]  ;;  %v173_v9 = vld [vmem:[#allocation2 + $0x188] sm:$0xff]  ;;  %v126_v23 = vld [vmem:[#allocation2 + $0x10] sm:$0xff] }
  0x20   :  { %114 = vmatpush.msra.mxu1 %v51_v38  ;;  %204 = vmatpush.msra.mxu2 %v134_v54  ;;  %v139_v10 = vld [vmem:[#allocation2 + $0x78] sm:$0xff]  ;;  %v137_v12 = vld [vmem:[#allocation2 + $0x68] sm:$0xff]  ;;  %v160_v24 = vld [vmem:[#allocation2 + $0x120] sm:$0xff] }
  0x21   :  { %95 = vmatpush.msra.mxu0 %v48_v41  ;;  %224 = vmatpush.msra.mxu3 %v166_v59  ;;  %v171_v11 = vld [vmem:[#allocation2 + $0x178] sm:$0xff]  ;;  %v169_v13 = vld [vmem:[#allocation2 + $0x168] sm:$0xff]  ;;  %v124_v27 = vld [vmem:[#allocation2] sm:$0xff] }
  0x22   :  { %115 = vmatpush.msra.mxu1 %v49_v42  ;;  %205 = vmatpush.msra.mxu2 %v132_v58  ;;  %v135_v14 = vld [vmem:[#allocation2 + $0x58] sm:$0xff]  ;;  %v133_v16 = vld [vmem:[#allocation2 + $0x48] sm:$0xff]  ;;  %v158_v28 = vld [vmem:[#allocation2 + $0x110] sm:$0xff] }
  0x23   :  { %96 = vmatpush.msra.mxu0 %v46_v45  ;;  %225 = vmatpush.msra.mxu3 %v164_v63  ;;  %v167_v15 = vld [vmem:[#allocation2 + $0x158] sm:$0xff]  ;;  %v165_v17 = vld [vmem:[#allocation2 + $0x148] sm:$0xff]  ;;  %v156_v31 = vld [vmem:[#allocation2 + $0x100] sm:$0xff] }
  0x24   :  { %116 = vmatpush.msra.mxu1 %v47_v46  ;;  %206 = vmatpush.msra.mxu2 %v130_v62  ;;  %v131_v18 = vld [vmem:[#allocation2 + $0x38] sm:$0xff]  ;;  %v129_v21 = vld [vmem:[#allocation2 + $0x28] sm:$0xff]  ;;  %v306_v34 = vld [vmem:[%s683_s5 + $0xf0] sm:$0xff] }
  0x25   :  { %97 = vmatpush.msra.mxu0 %v44_v49  ;;  %226 = vmatpush.msra.mxu3 %v162_v20  ;;  %v163_v22 = vld [vmem:[#allocation2 + $0x138] sm:$0xff]  ;;  %v161_v26 = vld [vmem:[#allocation2 + $0x128] sm:$0xff]  ;;  %v290_v36 = vld [vmem:[%s683_s5 + $0x70] sm:$0xff] }
  0x26   :  { %117 = vmatpush.msra.mxu1 %v45_v50  ;;  %98 = vmatmul.f32.vlgmr.msra.gmra.mxu0 %v43_v51  ;;  %v127_v25 = vld [vmem:[#allocation2 + $0x18] sm:$0xff]  ;;  %v125_v29 = vld [vmem:[#allocation2 + $0x8] sm:$0xff]  ;;  %v304_v39 = vld [vmem:[%s683_s5 + $0xe0] sm:$0xff] }
  0x27   :  { %118 = vmatmul.f32.vlgmr.msra.gmra.mxu1 %v43_v51  ;;  %234 = vmatpush.msrb.mxu0 %v155_v52  ;;  %v159_v30 = vld [vmem:[#allocation2 + $0x118] sm:$0xff]  ;;  %v157_v32 = vld [vmem:[#allocation2 + $0x108] sm:$0xff]  ;;  %v288_v40 = vld [vmem:[%s683_s5 + $0x60] sm:$0xff] }
  0x28   :  { %254 = vmatpush.msrb.mxu1 %v187_v53  ;;  %207 = vmatpush.msra.mxu2 %v128_v19  ;;  %v307_v33 = vld [vmem:[%s683_s5 + $0xf8] sm:$0xff]  ;;  %v305_v37 = vld [vmem:[%s683_s5 + $0xe8] sm:$0xff]  ;;  %v302_v43 = vld [vmem:[%s683_s5 + $0xd0] sm:$0xff] }
  0x29   :  { %235 = vmatpush.msrb.mxu0 %v153_v56  ;;  %227 = vmatpush.msra.mxu3 %v160_v24  ;;  %v291_v35 = vld [vmem:[%s683_s5 + $0x78] sm:$0xff]  ;;  %v289_v38 = vld [vmem:[%s683_s5 + $0x68] sm:$0xff]  ;;  %v286_v44 = vld [vmem:[%s683_s5 + $0x50] sm:$0xff] }
  0x2a   :  { %255 = vmatpush.msrb.mxu1 %v185_v57  ;;  %208 = vmatpush.msra.mxu2 %v126_v23  ;;  %v303_v41 = vld [vmem:[%s683_s5 + $0xd8] sm:$0xff]  ;;  %v301_v45 = vld [vmem:[%s683_s5 + $0xc8] sm:$0xff]  ;;  %v300_v47 = vld [vmem:[%s683_s5 + $0xc0] sm:$0xff] }
  0x2b   :  { %236 = vmatpush.msrb.mxu0 %v151_v60  ;;  %228 = vmatpush.msra.mxu3 %v158_v28  ;;  %v287_v42 = vld [vmem:[%s683_s5 + $0x58] sm:$0xff]  ;;  %v285_v46 = vld [vmem:[%s683_s5 + $0x48] sm:$0xff]  ;;  %v284_v48 = vld [vmem:[%s683_s5 + $0x40] sm:$0xff] }
  0x2c   :  { %256 = vmatpush.msrb.mxu1 %v183_v61  ;;  %209 = vmatpush.msra.mxu2 %v124_v27  ;;  %v299_v49 = vld [vmem:[%s683_s5 + $0xb8] sm:$0xff]  ;;  %v298_v51 = vld [vmem:[%s683_s5 + $0xb0] sm:$0xff]  ;;  %v297_v52 = vld [vmem:[%s683_s5 + $0xa8] sm:$0xff] }
  0x2d   :  { %237 = vmatpush.msrb.mxu0 %v149_v0  ;;  %229 = vmatpush.msra.mxu3 %v156_v31  ;;  %v283_v50 = vld [vmem:[%s683_s5 + $0x38] sm:$0xff]  ;;  %v76_v53 = vld [vmem:[%s680_s2] sm:$0x3]  ;;  %v282_v63 = vld [vmem:[%s683_s5 + $0x30] sm:$0xff]  ;;  %s358_s2 = sshll.u32 %s685_s7, 4  ;;  %s359_s2 = int_to_ptr.hbm [resolvable:$true] %s358_s2 }
  0x2e   :  { %257 = vmatpush.msrb.mxu1 %v181_v1  ;;  %309 = vmatpush.msrb.mxu2 %v291_v35  ;;  %v296_v54 = vld [vmem:[%s683_s5 + $0xa0] sm:$0xff]  ;;  %v78_v55 = vperm.slane %v76_v53, 0  ;;  %v79_v56 = vperm.slane %v76_v53, 1  ;;  %v295_v0 = vld [vmem:[%s683_s5 + $0x98] sm:$0xff]  ;;  %v281_v1 = vld [vmem:[%s683_s5 + $0x28] sm:$0xff] }
  0x2f   :  { %238 = vmatpush.msrb.mxu0 %v147_v2  ;;  %329 = vmatpush.msrb.mxu3 %v307_v33  ;;  %v294_v2 = vld [vmem:[%s683_s5 + $0x90] sm:$0xff]  ;;  %v308_v23 = vld [vmem:[%s684_s6] sm:$0x1] }
  0x30   :  { %258 = vmatpush.msrb.mxu1 %v179_v3  ;;  %310 = vmatpush.msrb.mxu2 %v290_v36  ;;  %v280_v3 = vld [vmem:[%s683_s5 + $0x20] sm:$0xff] }
  0x31   :  { %239 = vmatpush.msrb.mxu0 %v145_v4  ;;  %330 = vmatpush.msrb.mxu3 %v306_v34  ;;  %v293_v4 = vld [vmem:[%s683_s5 + $0x88] sm:$0xff] }
  0x32   :  { %259 = vmatpush.msrb.mxu1 %v177_v5  ;;  %311 = vmatpush.msrb.mxu2 %v289_v38  ;;  %v279_v5 = vld [vmem:[%s683_s5 + $0x18] sm:$0xff] }
  0x33   :  { %240 = vmatpush.msrb.mxu0 %v143_v6  ;;  %331 = vmatpush.msrb.mxu3 %v305_v37  ;;  %v292_v6 = vld [vmem:[%s683_s5 + $0x80] sm:$0xff] }
  0x34   :  { %260 = vmatpush.msrb.mxu1 %v175_v7  ;;  %312 = vmatpush.msrb.mxu2 %v288_v40  ;;  %v278_v7 = vld [vmem:[%s683_s5 + $0x10] sm:$0xff] }
  0x35   :  { %241 = vmatpush.msrb.mxu0 %v141_v8  ;;  %332 = vmatpush.msrb.mxu3 %v304_v39  ;;  %v277_v8 = vld [vmem:[%s683_s5 + $0x8] sm:$0xff] }
  0x36   :  { %261 = vmatpush.msrb.mxu1 %v173_v9  ;;  %313 = vmatpush.msrb.mxu2 %v287_v42  ;;  %v276_v9 = vld [vmem:[%s683_s5] sm:$0xff] }
  0x37   :  { %242 = vmatpush.msrb.mxu0 %v139_v10  ;;  %333 = vmatpush.msrb.mxu3 %v303_v41  ;;  %v188_v10 = vld [vmem:[%s682_s4] sm:$0x3]  ;;  %s427_s4 = smov [#allocation5]  }
  0x38   :  { %262 = vmatpush.msrb.mxu1 %v171_v11  ;;  %314 = vmatpush.msrb.mxu2 %v286_v44  ;;  %v191_v11 = vperm.slane %v188_v10, 1  ;;  %s356_s15 = sshll.u32 %s427_s4, 4  ;;  %s357_s15 = int_to_ptr.vmem [resolvable:$true] %s356_s15 }
  0x39   :  { %243 = vmatpush.msrb.mxu0 %v137_v12  ;;  %334 = vmatpush.msrb.mxu3 %v302_v43 }
  0x3a   :  { %263 = vmatpush.msrb.mxu1 %v169_v13  ;;  %315 = vmatpush.msrb.mxu2 %v285_v46 }
  0x3b   :  { %244 = vmatpush.msrb.mxu0 %v135_v14  ;;  %335 = vmatpush.msrb.mxu3 %v301_v45 }
  0x3c   :  { %264 = vmatpush.msrb.mxu1 %v167_v15  ;;  %316 = vmatpush.msrb.mxu2 %v284_v48 }
  0x3d   :  { %245 = vmatpush.msrb.mxu0 %v133_v16  ;;  %336 = vmatpush.msrb.mxu3 %v300_v47  ;;  %v190_v16 = vperm.slane %v188_v10, 0 }
  0x3e   :  { %265 = vmatpush.msrb.mxu1 %v165_v17  ;;  %317 = vmatpush.msrb.mxu2 %v283_v50 }
  0x3f   :  { %246 = vmatpush.msrb.mxu0 %v131_v18  ;;  %337 = vmatpush.msrb.mxu3 %v299_v49 }
  0x40   :  { %266 = vmatpush.msrb.mxu1 %v163_v22  ;;  %318 = vmatpush.msrb.mxu2 %v282_v63 }
  0x41   :  { %247 = vmatpush.msrb.mxu0 %v129_v21  ;;  %338 = vmatpush.msrb.mxu3 %v298_v51 }
  0x42   :  { %267 = vmatpush.msrb.mxu1 %v161_v26  ;;  %319 = vmatpush.msrb.mxu2 %v281_v1 }
  0x43   :  { %248 = vmatpush.msrb.mxu0 %v127_v25  ;;  %339 = vmatpush.msrb.mxu3 %v297_v52 }
  0x44   :  { %268 = vmatpush.msrb.mxu1 %v159_v30  ;;  %320 = vmatpush.msrb.mxu2 %v280_v3 }
  0x45   :  { %249 = vmatpush.msrb.mxu0 %v125_v29  ;;  %340 = vmatpush.msrb.mxu3 %v296_v54 }
  0x46   :  { %269 = vmatpush.msrb.mxu1 %v157_v32  ;;  %321 = vmatpush.msrb.mxu2 %v279_v5 }
  0x47   :  { %341 = vmatpush.msrb.mxu3 %v295_v0 }
  0x48   :  { %322 = vmatpush.msrb.mxu2 %v278_v7 }
  0x49   :  { %342 = vmatpush.msrb.mxu3 %v294_v2 }
  0x4a   :  { %323 = vmatpush.msrb.mxu2 %v277_v8 }
  0x4b   :  { %343 = vmatpush.msrb.mxu3 %v293_v4 }
  0x4c   :  { %324 = vmatpush.msrb.mxu2 %v276_v9 }
  0x4d   :  { %344 = vmatpush.msrb.mxu3 %v292_v6 }
  0xa3   :  { %v99_v57 = vpop.f32.mrf.mxu0 }
  0xa4   :  { %v119_v58 = vpop.f32.mrf.mxu1  ;;  %v100_v59 = vadd.f32 %v99_v57, %v78_v55 }
  0xa5   :  { %v120_v60 = vadd.f32 %v119_v58, %v79_v56 }
  0xa6   :  { %v122_v61 = vmax.f32 %v100_v59, 0.0 }
  0xa7   :  { %v123_v62 = vmax.f32 %v120_v60, 0.0 }
  0xa8   :  { %210 = vmatmul.f32.vlgmr.msra.gmra.mxu2 %v122_v61  ;;  %250 = vmatmul.f32.vlgmr.msrb.gmra.mxu0 %v122_v61 }
  0xa9   :  { %230 = vmatmul.f32.vlgmr.msra.gmra.mxu3 %v123_v62  ;;  %270 = vmatmul.f32.vlgmr.msrb.gmra.mxu1 %v123_v62 }
 0x125   :  { %v251_v12 = vpop.f32.mrf.mxu0 }
 0x126   :  { %v252_v13 = vadd.f32 %v251_v12, %v191_v11  ;;  %v271_v14 = vpop.f32.mrf.mxu1 }
 0x128   :  { %v272_v15 = vadd.f32 %v271_v14, %v252_v13 }
 0x12a   :  { %v275_v17 = vmax.f32 %v272_v15, 0.0 }
 0x12b   :  { %v211_v18 = vpop.f32.mrf.mxu2 }
 0x12c   :  { %v212_v19 = vadd.f32 %v211_v18, %v190_v16  ;;  %345 = vmatmul.f32.vlgmr.msrb.gmra.mxu3 %v275_v17  ;;  %v231_v20 = vpop.f32.mrf.mxu3 }
 0x12e   :  { %v232_v21 = vadd.f32 %v231_v20, %v212_v19 }
 0x130   :  { %v274_v22 = vmax.f32 %v232_v21, 0.0 }
 0x132   :  { %325 = vmatmul.f32.vlgmr.msrb.gmra.mxu2 %v274_v22 }
 0x1af   :  { %v346_v26 = vpop.f32.mrf.mxu3 }
 0x1b5   :  { %v326_v24 = vpop.f32.mrf.mxu2 }
 0x1b6   :  { %v327_v25 = vadd.f32 %v326_v24, %v308_v23 }
 0x1b8   :  { %v347_v27 = vadd.f32 %v346_v26, %v327_v25 }
 0x1ba   :  { %350 = vst.msk [vmem:[#allocation5] sm:$0x1] %vm349_vm0, %v347_v27 }
 0x1bb   :  { %361 = dma.vmem_to_hbm [thread:$0]  %s357_s15, 16, %s359_s2, [#allocation4]  }
 0x1bc   :  { %422 = dma.done.wait [#allocation4], 16  }
 0x1bd   :  { %423 = vsyncadd [#allocation4], 4294967280 }
 0x1be   :  { %366 = vsyncpa [#allocation3], 1 }
 0x1bf   :  { %367 = vsyncpa [#allocation4], 1 }

</bundles_post_ra>
